<compile_context>
chip_gen: v7x
topology: tpu7x:2x2x1
jax: 0.10.0
libtpu: 0.0.40
codegen_flags: <defaults>
</compile_context>

<pallas_src>
import functools

import jax
import jax.numpy as jnp
from jax.experimental import pallas as pl
from jax.experimental.pallas import tpu as pltpu


def _gcn_fused_kernel(a_ref, x_ref, w1_ref, b1_ref, w2_ref, b2_ref, o_ref):
    """Fused 2-layer GCN: out = A @ relu(A @ (X@W1) + b1) @ W2 + b2 (padded F_out)."""
    a = a_ref[...]  # bf16 [N, N]

    # ----- Layer 1: H1 = relu(A_hat @ (X @ W1) + b1) -----
    xw1 = jnp.dot(x_ref[...], w1_ref[...], preferred_element_type=jnp.float32)
    h1 = jnp.dot(a, xw1.astype(jnp.bfloat16), preferred_element_type=jnp.float32)
    h1 = jnp.maximum(h1 + b1_ref[...], 0.0)            # bias [1, H] broadcasts

    # ----- Layer 2: out = A_hat @ (H1 @ W2) + b2 (W2/b2 lane-padded to 128) -----
    xw2 = jnp.dot(h1.astype(jnp.bfloat16), w2_ref[...],
                  preferred_element_type=jnp.float32)
    out = jnp.dot(a, xw2.astype(jnp.bfloat16), preferred_element_type=jnp.float32)
    o_ref[...] = (out + b2_ref[...]).astype(o_ref.dtype)


def gcn_forward(a_hat, x, params, *, lane_pad=128):
    """Two fused GraphConv layers. Returns [N, num_classes] float32 logits."""
    n = a_hat.shape[0]
    in_feats = x.shape[1]
    hidden = params["w1"].shape[1]
    num_classes = params["w2"].shape[1]

    # Lane-dense output: pad the final feature dim (and its weight/bias) to 128.
    f_out_pad = max(lane_pad, num_classes)
    w2_pad = jnp.zeros((hidden, f_out_pad), jnp.float32).at[:, :num_classes].set(
        params["w2"])
    b2_pad = jnp.zeros((1, f_out_pad), jnp.float32).at[:, :num_classes].set(
        params["b2"].reshape(1, num_classes))

    # bf16 operands for the MXU, f32 biases / accumulation.
    a_bf = a_hat.astype(jnp.bfloat16)
    x_bf = x.astype(jnp.bfloat16)
    w1_bf = params["w1"].astype(jnp.bfloat16)
    w2_bf = w2_pad.astype(jnp.bfloat16)
    b1_2d = params["b1"].reshape(1, hidden).astype(jnp.float32)

    out_pad = pl.pallas_call(
        _gcn_fused_kernel,
        out_shape=jax.ShapeDtypeStruct((n, f_out_pad), jnp.float32),
        in_specs=[
            pl.BlockSpec((n, n), lambda: (0, 0)),
            pl.BlockSpec((n, in_feats), lambda: (0, 0)),
            pl.BlockSpec((in_feats, hidden), lambda: (0, 0)),
            pl.BlockSpec((1, hidden), lambda: (0, 0)),
            pl.BlockSpec((hidden, f_out_pad), lambda: (0, 0)),
            pl.BlockSpec((1, f_out_pad), lambda: (0, 0)),
        ],
        out_specs=pl.BlockSpec((n, f_out_pad), lambda: (0, 0)),
        compiler_params=pltpu.CompilerParams(vmem_limit_bytes=64 << 20),
    )(a_bf, x_bf, w1_bf, b1_2d, w2_bf, b2_pad)

    return out_pad[:, :num_classes]


def build_normalized_adjacency(key, n_nodes, edge_prob=0.15):
    """Symmetric random graph + self loops, with D^{-1/2} A D^{-1/2} norm."""
    mask = jax.random.bernoulli(key, p=edge_prob, shape=(n_nodes, n_nodes))
    adj = jnp.asarray(mask, jnp.float32)
    adj = jnp.maximum(adj, adj.T)                      # undirected
    adj = jnp.maximum(adj, jnp.eye(n_nodes))           # self loops (no zero-degree)
    deg = adj.sum(axis=1)
    d_inv_sqrt = 1.0 / jnp.sqrt(deg)
    return adj * d_inv_sqrt[:, None] * d_inv_sqrt[None, :]


if __name__ == "__main__":
    # Small, deterministic problem: 64 nodes, in_feats=32, hidden=32, classes=8.
    n_nodes, in_feats, hidden_dim, num_classes = 64, 32, 32, 8

    key = jax.random.PRNGKey(0)
    k_graph, k_x, k_w1, k_w2 = jax.random.split(key, 4)

    a_hat = build_normalized_adjacency(k_graph, n_nodes)
    x = jax.random.normal(k_x, (n_nodes, in_feats), dtype=jnp.float32)

    # Deterministic Glorot-style init for the GraphConv weights, zero bias
    # (matches DGL GraphConv's default init scheme in spirit).
    def glorot(k, shape):
        fan_in, fan_out = shape
        limit = jnp.sqrt(6.0 / (fan_in + fan_out))
        return jax.random.uniform(k, shape, jnp.float32, -limit, limit)

    params = {
        "w1": glorot(k_w1, (in_feats, hidden_dim)),
        "b1": jnp.zeros((hidden_dim,), jnp.float32),
        "w2": glorot(k_w2, (hidden_dim, num_classes)),
        "b2": jnp.zeros((num_classes,), jnp.float32),
    }

    out = jax.block_until_ready(gcn_forward(a_hat, x, params))

    # Reference in plain JAX (same math, f32). bf16 operands inside the kernel
    # → relaxed tolerance.
    ref = jnp.maximum(a_hat @ x @ params["w1"] + params["b1"], 0.0)
    ref = a_hat @ ref @ params["w2"] + params["b2"]
    assert out.shape == (n_nodes, num_classes)
    assert jnp.allclose(out, ref, atol=5e-2, rtol=5e-2), (
        float(jnp.max(jnp.abs(out - ref))))

    print("KERNEL_OK")
</pallas_src>

<mosaic_0001>
module attributes {stable_mosaic.version = 11 : i64} {
  func.func @_gcn_fused_kernel(%arg0: memref<64x64xbf16, #tpu.memory_space<vmem>>, %arg1: memref<64x32xbf16, #tpu.memory_space<vmem>>, %arg2: memref<32x32xbf16, #tpu.memory_space<vmem>>, %arg3: memref<1x32xf32, #tpu.memory_space<vmem>>, %arg4: memref<32x128xbf16, #tpu.memory_space<vmem>>, %arg5: memref<1x128xf32, #tpu.memory_space<vmem>>, %arg6: memref<64x128xf32, #tpu.memory_space<vmem>>) attributes {dimension_semantics = [], scalar_prefetch = 0 : i64, scratch_operands = 0 : i64, tpu.core_type = #tpu.core_type<tc>} {
    %c0 = arith.constant 0 : index
    %c0_0 = arith.constant 0 : index
    %0 = vector.load %arg0[%c0, %c0_0] : memref<64x64xbf16, #tpu.memory_space<vmem>>, vector<64x64xbf16>
    %c0_1 = arith.constant 0 : index
    %c0_2 = arith.constant 0 : index
    %1 = vector.load %arg1[%c0_1, %c0_2] : memref<64x32xbf16, #tpu.memory_space<vmem>>, vector<64x32xbf16>
    %c0_3 = arith.constant 0 : index
    %c0_4 = arith.constant 0 : index
    %2 = vector.load %arg2[%c0_3, %c0_4] : memref<32x32xbf16, #tpu.memory_space<vmem>>, vector<32x32xbf16>
    %cst = arith.constant dense<0.000000e+00> : vector<64x32xf32>
    %3 = tpu.matmul %1, %2, %cst {dimension_numbers = #tpu.dot_dimension_numbers<[1], [0], [0], [1], [0, 0, 1, 1], [], []>} : vector<64x32xbf16>, vector<32x32xbf16>, vector<64x32xf32> -> vector<64x32xf32>
    %4 = arith.truncf %3 : vector<64x32xf32> to vector<64x32xbf16>
    %cst_5 = arith.constant dense<0.000000e+00> : vector<64x32xf32>
    %5 = tpu.matmul %0, %4, %cst_5 {dimension_numbers = #tpu.dot_dimension_numbers<[1], [0], [0], [1], [0, 0, 1, 1], [], []>} : vector<64x64xbf16>, vector<64x32xbf16>, vector<64x32xf32> -> vector<64x32xf32>
    %c0_6 = arith.constant 0 : index
    %c0_7 = arith.constant 0 : index
    %6 = vector.load %arg3[%c0_6, %c0_7] : memref<1x32xf32, #tpu.memory_space<vmem>>, vector<1x32xf32>
    %7 = vector.broadcast %6 : vector<1x32xf32> to vector<64x32xf32>
    %8 = arith.addf %5, %7 : vector<64x32xf32>
    %cst_8 = arith.constant 0.000000e+00 : f32
    %9 = vector.broadcast %cst_8 : f32 to vector<64x32xf32>
    %10 = arith.maximumf %8, %9 : vector<64x32xf32>
    %11 = arith.truncf %10 : vector<64x32xf32> to vector<64x32xbf16>
    %c0_9 = arith.constant 0 : index
    %c0_10 = arith.constant 0 : index
    %12 = vector.load %arg4[%c0_9, %c0_10] : memref<32x128xbf16, #tpu.memory_space<vmem>>, vector<32x128xbf16>
    %cst_11 = arith.constant dense<0.000000e+00> : vector<64x128xf32>
    %13 = tpu.matmul %11, %12, %cst_11 {dimension_numbers = #tpu.dot_dimension_numbers<[1], [0], [0], [1], [0, 0, 1, 1], [], []>} : vector<64x32xbf16>, vector<32x128xbf16>, vector<64x128xf32> -> vector<64x128xf32>
    %14 = arith.truncf %13 : vector<64x128xf32> to vector<64x128xbf16>
    %cst_12 = arith.constant dense<0.000000e+00> : vector<64x128xf32>
    %15 = tpu.matmul %0, %14, %cst_12 {dimension_numbers = #tpu.dot_dimension_numbers<[1], [0], [0], [1], [0, 0, 1, 1], [], []>} : vector<64x64xbf16>, vector<64x128xbf16>, vector<64x128xf32> -> vector<64x128xf32>
    %c0_13 = arith.constant 0 : index
    %c0_14 = arith.constant 0 : index
    %16 = vector.load %arg5[%c0_13, %c0_14] : memref<1x128xf32, #tpu.memory_space<vmem>>, vector<1x128xf32>
    %17 = vector.broadcast %16 : vector<1x128xf32> to vector<64x128xf32>
    %18 = arith.addf %15, %17 : vector<64x128xf32>
    %c0_15 = arith.constant 0 : index
    %c0_16 = arith.constant 0 : index
    %19 = vector.load %arg6[%c0_15, %c0_16] : memref<64x128xf32, #tpu.memory_space<vmem>>, vector<64x128xf32>
    tpu.vector_store %arg6[%c0_15, %c0_16], %18 {strides = array<i32>} : memref<64x128xf32, #tpu.memory_space<vmem>>, vector<64x128xf32>,
    return
  }
}

</mosaic_0001>

<bundles_post_ra>
// kernel: tpu_custom_call.1
= control target key start
LH: loop header
LB: loop body
LE: loop exit
PB: predicated region body
PF: predicated region fallthrough
CT: control target
= control target key end

     0   :  { %11 = vsyncpa [#allocation3], 0  ;;  %s1033_s0 = inlined_call_operand.hbm [shape: bf16[64,64], index: 0, kind: input, shape index: {}]   ;;  %s1034_s1 = inlined_call_operand.hbm [shape: bf16[64,32], index: 1, kind: input, shape index: {}]   ;;  %s1035_s2 = inlined_call_operand.hbm [shape: bf16[32,32], index: 2, kind: input, shape index: {}]   ;;  %s1036_s3 = inlined_call_operand.hbm [shape: f32[1,32], index: 3, kind: input, shape index: {}]   ;;  %s1037_s4 = inlined_call_operand.hbm [shape: bf16[32,128], index: 4, kind: input, shape index: {}]   ;;  %s1038_s5 = inlined_call_operand.hbm [shape: f32[1,128], index: 5, kind: input, shape index: {}]   ;;  %s1039_s6 = inlined_call_operand.hbm [shape: f32[64,128], index: 6, kind: output, shape index: {}]  }
   0x1   :  { %12 = vsyncpa [#allocation6], 0 }
   0x2   :  { %13 = vsyncpa [#allocation9], 0 }
   0x3   :  { %14 = vsyncpa [#allocation12], 0 }
   0x4   :  { %15 = vsyncpa [#allocation4], 0  ;;  %s852_s21 = smov [#allocation5]   ;;  %s853_s23 = smov [#allocation8]  }
   0x5   :  { %s33_s22 = sshll.u32 %s852_s21, 4  ;;  %s58_s24 = sshll.u32 %s853_s23, 4  ;;  %s34_s22 = int_to_ptr.vmem [resolvable:$true] %s33_s22  ;;  %s898_s24 = int_to_ptr.vmem [resolvable:$true] %s58_s24 }
   0x6   :  { %s688_s27 = scalar_lea.hbm %s1034_s1, 512 }
   0x7   :  { %p689_p0 = scmp.ne.s32.totalorder %s1034_s1, %s688_s27  ;;  %p692_p1 = scmp.lt.u32.totalorder %s688_s27, %s1034_s1 }
   0x9   :  { %p694_p2 = pnand %p692_p1, %p689_p0 }
   0xb   :  { %697 = shalt.err (!%p694_p2)
}
   0xc   :  { %s698_s8 = scalar_lea.vmem %s34_s22, 512  ;;  %p703_p4 = scmp.lt.s32.totalorder %s34_s22, %s34_s22 }
   0xd   :  { %p699_p3 = scmp.ne.s32.totalorder %s34_s22, %s698_s8  ;;  %p704_p5 = scmp.lt.s32.totalorder %s698_s8, %s698_s8 }
   0xf   :  { %p705_p6 = por %p704_p5, %p703_p4 }
  0x11   :  { %p706_p7 = pnand %p705_p6, %p699_p3 }
  0x13   :  { %709 = shalt.err (!%p706_p7)
}
  0x14   :  { %s854_s9 = smov 64   ;;  %s855_s10 = smov 4  }
  0x15   :  { %39 = dma.hbm_to_vmem [thread:$0]  %s1034_s1, 512, %s34_s22, [#allocation6], %s854_s9, %s854_s9, %s855_s10  }
  0x16   :  { %s710_s15 = scalar_lea.hbm %s1036_s3, 16 }
  0x17   :  { %p711_p8 = scmp.ne.s32.totalorder %s1036_s3, %s710_s15  ;;  %p714_p9 = scmp.lt.u32.totalorder %s710_s15, %s1036_s3 }
  0x19   :  { %p716_p10 = pnand %p714_p9, %p711_p8 }
  0x1b   :  { %719 = shalt.err (!%p716_p10)
}
  0x1c   :  { %s720_s20 = scalar_lea.vmem %s898_s24, 16  ;;  %s724_s1 = scalar_lea.vmem %s898_s24, 32 }
  0x1d   :  { %p721_p11 = scmp.ne.s32.totalorder %s898_s24, %s720_s20  ;;  %p725_p12 = scmp.lt.s32.totalorder %s898_s24, %s898_s24 }
  0x1e   :  { %p726_p13 = scmp.lt.s32.totalorder %s724_s1, %s720_s20 }
  0x20   :  { %p727_p0 = por %p726_p13, %p725_p12 }
  0x22   :  { %p728_p1 = pnand %p727_p0, %p721_p11 }
  0x24   :  { %731 = shalt.err (!%p728_p1)
}
  0x25   :  { %61 = dma.hbm_to_vmem [thread:$0]  %s1036_s3, 16, %s898_s24, [#allocation9]  }
  0x26   :  { %s856_s23 = smov [#allocation2]   ;;  %s857_s26 = smov [#allocation7]  }
  0x27   :  { %s21_s25 = sshll.u32 %s856_s23, 4  ;;  %s45_s27 = sshll.u32 %s857_s26, 4  ;;  %s22_s25 = int_to_ptr.vmem [resolvable:$true] %s21_s25  ;;  %s933_s27 = int_to_ptr.vmem [resolvable:$true] %s45_s27 }
  0x28   :  { %s732_s30 = scalar_lea.hbm %s1033_s0, 512 }
  0x29   :  { %p733_p2 = scmp.ne.s32.totalorder %s1033_s0, %s732_s30  ;;  %p736_p3 = scmp.lt.u32.totalorder %s732_s30, %s1033_s0 }
  0x2b   :  { %p738_p4 = pnand %p736_p3, %p733_p2 }
  0x2d   :  { %741 = shalt.err (!%p738_p4)
}
  0x2e   :  { %s742_s3 = scalar_lea.vmem %s22_s25, 512  ;;  %p747_p6 = scmp.lt.s32.totalorder %s22_s25, %s22_s25 }
  0x2f   :  { %p743_p5 = scmp.ne.s32.totalorder %s22_s25, %s742_s3  ;;  %p748_p7 = scmp.lt.s32.totalorder %s742_s3, %s742_s3 }
  0x31   :  { %p749_p8 = por %p748_p7, %p747_p6 }
  0x33   :  { %p750_p9 = pnand %p749_p8, %p743_p5 }
  0x35   :  { %753 = shalt.err (!%p750_p9)
}
  0x36   :  { %27 = dma.hbm_to_vmem [thread:$0]  %s1033_s0, 512, %s22_s25, [#allocation3], %s854_s9, %s854_s9, %s855_s10  }
  0x37   :  { %s754_s16 = scalar_lea.hbm %s1035_s2, 256 }
  0x38   :  { %p755_p10 = scmp.ne.s32.totalorder %s1035_s2, %s754_s16  ;;  %p758_p11 = scmp.lt.u32.totalorder %s754_s16, %s1035_s2 }
  0x3a   :  { %p760_p12 = pnand %p758_p11, %p755_p10 }
  0x3c   :  { %763 = shalt.err (!%p760_p12)
}
  0x3d   :  { %s764_s1 = scalar_lea.vmem %s933_s27, 256  ;;  %p769_p0 = scmp.lt.s32.totalorder %s933_s27, %s933_s27 }
  0x3e   :  { %p765_p13 = scmp.ne.s32.totalorder %s933_s27, %s764_s1  ;;  %p770_p1 = scmp.lt.s32.totalorder %s764_s1, %s764_s1 }
  0x40   :  { %p771_p2 = por %p770_p1, %p769_p0 }
  0x42   :  { %p772_p3 = pnand %p771_p2, %p765_p13 }
  0x44   :  { %775 = shalt.err (!%p772_p3)
}
  0x45   :  { %51 = dma.hbm_to_vmem [thread:$0]  %s1035_s2, 256, %s933_s27, [#allocation6], %s854_s9, %s854_s9, %s855_s10  }
  0x46   :  { %s858_s22 = smov [#allocation10]   ;;  %s859_s25 = smov [#allocation11]  }
  0x47   :  { %s67_s23 = sshll.u32 %s858_s22, 4  ;;  %s80_s26 = sshll.u32 %s859_s25, 4  ;;  %s68_s23 = int_to_ptr.vmem [resolvable:$true] %s67_s23  ;;  %s81_s26 = int_to_ptr.vmem [resolvable:$true] %s80_s26 }
  0x48   :  { %s776_s30 = scalar_lea.hbm %s1037_s4, 256 }
  0x49   :  { %p777_p4 = scmp.ne.s32.totalorder %s1037_s4, %s776_s30  ;;  %p780_p5 = scmp.lt.u32.totalorder %s776_s30, %s1037_s4 }
  0x4b   :  { %p782_p6 = pnand %p780_p5, %p777_p4 }
  0x4d   :  { %785 = shalt.err (!%p782_p6)
}
  0x4e   :  { %s786_s2 = scalar_lea.vmem %s68_s23, 256  ;;  %p791_p8 = scmp.lt.s32.totalorder %s68_s23, %s68_s23 }
  0x4f   :  { %p787_p7 = scmp.ne.s32.totalorder %s68_s23, %s786_s2  ;;  %p792_p9 = scmp.lt.s32.totalorder %s786_s2, %s786_s2 }
  0x51   :  { %p793_p10 = por %p792_p9, %p791_p8 }
  0x53   :  { %p794_p11 = pnand %p793_p10, %p787_p7 }
  0x55   :  { %797 = shalt.err (!%p794_p11)
}
  0x56   :  { %73 = dma.hbm_to_vmem [thread:$0]  %s1037_s4, 256, %s68_s23, [#allocation9], %s854_s9, %s854_s9, %s855_s10  }
  0x57   :  { %s798_s14 = scalar_lea.hbm %s1038_s5, 16 }
  0x58   :  { %p799_p12 = scmp.ne.s32.totalorder %s1038_s5, %s798_s14  ;;  %p802_p13 = scmp.lt.u32.totalorder %s798_s14, %s1038_s5 }
  0x5a   :  { %p804_p0 = pnand %p802_p13, %p799_p12 }
  0x5c   :  { %807 = shalt.err (!%p804_p0)
}
  0x5d   :  { %s808_s19 = scalar_lea.vmem %s81_s26, 16  ;;  %s812_s20 = scalar_lea.vmem %s81_s26, 32 }
  0x5e   :  { %p809_p1 = scmp.ne.s32.totalorder %s81_s26, %s808_s19  ;;  %p813_p2 = scmp.lt.s32.totalorder %s81_s26, %s81_s26 }
  0x5f   :  { %p814_p3 = scmp.lt.s32.totalorder %s812_s20, %s808_s19 }
  0x61   :  { %p815_p4 = por %p814_p3, %p813_p2 }
  0x63   :  { %p816_p5 = pnand %p815_p4, %p809_p1 }
  0x65   :  { %819 = shalt.err (!%p816_p5)
}
  0x66   :  { %83 = dma.hbm_to_vmem [thread:$0]  %s1038_s5, 16, %s81_s26, [#allocation12]  }
  0x67   :  { %842 = dma.done.wait [#allocation3], 512  }
  0x68   :  { %843 = vsyncadd [#allocation3], 4294966784 }
  0x69   :  { %844 = dma.done.wait [#allocation6], 768  }
  0x6a   :  { %845 = vsyncadd [#allocation6], 4294966528 }
  0x6b   :  { %846 = dma.done.wait [#allocation9], 272  }
  0x6c   :  { %847 = vsyncadd [#allocation9], 4294967024 }
  0x6d   :  { %848 = dma.done.wait [#allocation12], 16  }
  0x6e   :  { %849 = vsyncadd [#allocation12], 4294967280  ;;  %v676_v0 = vld [vmem:[#allocation7] sm:$0xff]   ;;  %v677_v1 = vld [vmem:[#allocation7 + $0x8] sm:$0xff]   ;;  %vm155_vm0 = vcmask 261120   ;;  %vm264_vm1 = vcmask 523264  }
  0x6f   :  { %609 = vmatprep.subr.bf16.mxu0 %v676_v0  ;;  %v678_v2 = vld [vmem:[#allocation5] sm:$0xff]   ;;  %v679_v3 = vld [vmem:[#allocation5 + $0x8] sm:$0xff]   ;;  %v680_v4 = vld [vmem:[#allocation5 + $0x10] sm:$0xff]   ;;  %s860_s5 = smov [#allocation13]  }
  0x70   :  { %610 = vmatpush3.bf16.msra.mxu0 %v676_v0  ;;  %613 = vmatprep.mubr.msk.bf16.mxu0 %vm155_vm0, %v678_v2  ;;  %v681_v5 = vld [vmem:[#allocation5 + $0x18] sm:$0xff]   ;;  %v682_v6 = vld [vmem:[#allocation2] sm:$0xff]   ;;  %v1002_v20 = vld [vmem:[#allocation2 + $0x8] sm:$0xff]   ;;  %s536_s10 = sshll.u32 %s860_s5, 4  ;;  %s537_s10 = int_to_ptr.vmem [resolvable:$true] %s536_s10 }
  0x71   :  { %611 = vmatprep.subr.bf16.mxu0 %v677_v1  ;;  %629 = vmatprep.mubr.msk.bf16.mxu1 %vm264_vm1, %v682_v6  ;;  %v686_v7 = vld [vmem:[#allocation10] sm:$0xff]   ;;  %v687_v23 = vld [vmem:[#allocation10 + $0x8] sm:$0xff]   ;;  %v561_v24 = vld [vmem:[#allocation8] ss:$0 sm:$0xff]  ;;  %s820_s1 = scalar_lea.vmem %s537_s10, 1024  ;;  %p825_p7 = scmp.lt.s32.totalorder %s537_s10, %s537_s10 }
  0x72   :  { %v1004_v21 = vld [vmem:[#allocation2 + $0x10] sm:$0xff]   ;;  %v685_v22 = vld [vmem:[#allocation2 + $0x18] sm:$0xff]   ;;  %p821_p6 = scmp.ne.s32.totalorder %s537_s10, %s820_s1  ;;  %p826_p8 = scmp.lt.s32.totalorder %s820_s1, %s820_s1 }
  0x74   :  { %612 = vmatpush3.bf16.msra.mxu0 %v677_v1  ;;  %v576_v1 = vld [vmem:[#allocation11] ss:$0 sm:$0xff]  ;;  %p827_p9 = por %p826_p8, %p825_p7 }
  0x75   :  { %637 = vmatprep.subr.bf16.mxu0 %v686_v7 }
  0x76   :  { %p828_p10 = pnand %p827_p9, %p821_p6 }
  0x77   :  { %614 = vmatmul.mubr.msk.bf16.vlgmr.msra.gmra.mrb[0].mxu0 %vm155_vm0, %v679_v3 }
  0x78   :  { %617 = vmatprep.mubr.msk.bf16.mxu0 %vm155_vm0, %v680_v4  ;;  %638 = vmatpush3.bf16.msra.mxu0 %v686_v7 }
  0x79   :  { %639 = vmatprep.subr.bf16.mxu0 %v687_v23 }
  0x7c   :  { %640 = vmatpush3.bf16.msra.mxu0 %v687_v23 }
  0x7f   :  { %618 = vmatmul.mubr.msk.bf16.gmra.mrb[4].mxu0 %vm155_vm0, %v681_v5 }
 0x14a   :  { %v615_v8 = vpop.f32.mrb[0].mxu0 }
 0x14b   :  { %v202_v9 = vpop.f32.mrb[1].mxu0 }
 0x14c   :  { %v616_v10 = vpop.f32.mrb[2].mxu0 }
 0x14d   :  { %v234_v11 = vpack.c.bf16 %v616_v10, %v615_v8  ;;  %v205_v12 = vpop.f32.mrb[3].mxu0 }
 0x14e   :  { %v233_v13 = vpack.c.bf16 %v205_v12, %v202_v9 }
 0x150   :  { %621 = vmatprep.subr.bf16.mxu1 %v233_v13 }
 0x151   :  { %622 = vmatpush3.bf16.msra.mxu1 %v233_v13 }
 0x152   :  { %v619_v14 = vpop.f32.mrb[4].mxu0  ;;  %623 = vmatprep.subr.bf16.mxu1 %v234_v11 }
 0x153   :  { %v218_v15 = vpop.f32.mrb[5].mxu0 }
 0x154   :  { %v620_v16 = vpop.f32.mrb[6].mxu0 }
 0x155   :  { %v236_v17 = vpack.c.bf16 %v620_v16, %v619_v14  ;;  %v221_v18 = vpop.f32.mrb[7].mxu0  ;;  %624 = vmatpush3.bf16.msra.mxu1 %v234_v11 }
 0x156   :  { %v235_v19 = vpack.c.bf16 %v221_v18, %v218_v15 }
 0x158   :  { %625 = vmatprep.subr.bf16.mxu1 %v235_v19 }
 0x159   :  { %626 = vmatpush3.bf16.msra.mxu1 %v235_v19 }
 0x15a   :  { %627 = vmatprep.subr.bf16.mxu1 %v236_v17 }
 0x15d   :  { %628 = vmatpush3.bf16.msra.mxu1 %v236_v17 }
 0x160   :  { %630 = vmatmul.mubr.msk.bf16.vlgmr.msra.gmra.mrb[0].mxu1 %vm264_vm1, %v1002_v20 }
 0x161   :  { %633 = vmatprep.mubr.msk.bf16.mxu1 %vm264_vm1, %v1004_v21 }
 0x168   :  { %634 = vmatmul.mubr.msk.bf16.gmra.mrb[4].mxu1 %vm264_vm1, %v685_v22 }
 0x169   :  { %657 = vmatprep.mubr.msk.bf16.mxu1 %vm264_vm1, %v682_v6 }
 0x233   :  { %v631_v25 = vpop.f32.mrb[0].mxu1 }
 0x234   :  { %v320_v26 = vadd.f32 %v631_v25, %v561_v24  ;;  %v311_v27 = vpop.f32.mrb[1].mxu1 }
 0x235   :  { %v312_v28 = vadd.f32 %v561_v24, %v311_v27  ;;  %v632_v29 = vpop.f32.mrb[2].mxu1 }
 0x236   :  { %v323_v30 = vadd.f32 %v632_v29, %v561_v24  ;;  %v314_v31 = vpop.f32.mrb[3].mxu1  ;;  %v344_v33 = vmax.f32 %v320_v26, 0.0 }
 0x237   :  { %v315_v32 = vadd.f32 %v561_v24, %v314_v31  ;;  %v342_v35 = vmax.f32 %v312_v28, 0.0 }
 0x238   :  { %v345_v34 = vmax.f32 %v323_v30, 0.0 }
 0x239   :  { %v343_v36 = vmax.f32 %v315_v32, 0.0 }
 0x23a   :  { %v351_v37 = vpack.c.bf16 %v345_v34, %v344_v33 }
 0x23b   :  { %v350_v38 = vpack.c.bf16 %v343_v36, %v342_v35  ;;  %v635_v39 = vpop.f32.mrb[4].mxu1 }
 0x23c   :  { %v336_v40 = vadd.f32 %v635_v39, %v561_v24  ;;  %v327_v41 = vpop.f32.mrb[5].mxu1 }
 0x23d   :  { %v328_v42 = vadd.f32 %v561_v24, %v327_v41  ;;  %v636_v43 = vpop.f32.mrb[6].mxu1  ;;  %641 = vmatprep.mubr.msk.bf16.mxu0 %vm155_vm0, %v350_v38 }
 0x23e   :  { %v339_v44 = vadd.f32 %v636_v43, %v561_v24  ;;  %v330_v45 = vpop.f32.mrb[7].mxu1  ;;  %642 = vmatmul.mubr.msk.bf16.vlgmr.msra.gmra.mrb[8].mxu0 %vm155_vm0, %v351_v37  ;;  %v348_v47 = vmax.f32 %v336_v40, 0.0 }
 0x23f   :  { %v331_v46 = vadd.f32 %v561_v24, %v330_v45  ;;  %v346_v49 = vmax.f32 %v328_v42, 0.0 }
 0x240   :  { %v349_v48 = vmax.f32 %v339_v44, 0.0 }
 0x241   :  { %v347_v50 = vmax.f32 %v331_v46, 0.0 }
 0x242   :  { %v353_v51 = vpack.c.bf16 %v349_v48, %v348_v47 }
 0x243   :  { %v352_v52 = vpack.c.bf16 %v347_v50, %v346_v49 }
 0x245   :  { %645 = vmatprep.mubr.msk.bf16.mxu0 %vm155_vm0, %v352_v52 }
 0x246   :  { %646 = vmatmul.mubr.msk.bf16.gmra.mrb[12].mxu0 %vm155_vm0, %v353_v51 }
 0x311   :  { %v643_v53 = vpop.f32.mrb[8].mxu0 }
 0x312   :  { %v416_v54 = vpop.f32.mrb[9].mxu0 }
 0x313   :  { %v644_v55 = vpop.f32.mrb[10].mxu0 }
 0x314   :  { %v448_v56 = vpack.c.bf16 %v644_v55, %v643_v53  ;;  %v419_v57 = vpop.f32.mrb[11].mxu0 }
 0x315   :  { %v447_v58 = vpack.c.bf16 %v419_v57, %v416_v54 }
 0x317   :  { %649 = vmatprep.subr.bf16.mxu1 %v447_v58 }
 0x318   :  { %650 = vmatpush3.bf16.msra.mxu1 %v447_v58 }
 0x319   :  { %v647_v59 = vpop.f32.mrb[12].mxu0  ;;  %651 = vmatprep.subr.bf16.mxu1 %v448_v56 }
 0x31a   :  { %v432_v60 = vpop.f32.mrb[13].mxu0 }
 0x31b   :  { %v648_v61 = vpop.f32.mrb[14].mxu0 }
 0x31c   :  { %v450_v62 = vpack.c.bf16 %v648_v61, %v647_v59  ;;  %v435_v63 = vpop.f32.mrb[15].mxu0  ;;  %652 = vmatpush3.bf16.msra.mxu1 %v448_v56 }
 0x31d   :  { %v449_v0 = vpack.c.bf16 %v435_v63, %v432_v60 }
 0x31f   :  { %653 = vmatprep.subr.bf16.mxu1 %v449_v0 }
 0x320   :  { %654 = vmatpush3.bf16.msra.mxu1 %v449_v0 }
 0x321   :  { %655 = vmatprep.subr.bf16.mxu1 %v450_v62 }
 0x324   :  { %656 = vmatpush3.bf16.msra.mxu1 %v450_v62 }
 0x327   :  { %658 = vmatmul.mubr.msk.bf16.vlgmr.msra.gmra.mrb[8].mxu1 %vm264_vm1, %v1002_v20 }
 0x328   :  { %661 = vmatprep.mubr.msk.bf16.mxu1 %vm264_vm1, %v1004_v21 }
 0x32f   :  { %662 = vmatmul.mubr.msk.bf16.gmra.mrb[12].mxu1 %vm264_vm1, %v685_v22 }
 0x3fa   :  { %v659_v2 = vpop.f32.mrb[8].mxu1 }
 0x3fb   :  { %v501_v3 = vadd.f32 %v659_v2, %v576_v1  ;;  %v492_v4 = vpop.f32.mrb[9].mxu1 }
 0x3fc   :  { %v493_v5 = vadd.f32 %v576_v1, %v492_v4  ;;  %v660_v6 = vpop.f32.mrb[10].mxu1 }
 0x3fd   :  { %525 = vst [vmem:[#allocation13 + $0x10] sm:$0xff] %v501_v3  ;;  %v504_v7 = vadd.f32 %v660_v6, %v576_v1  ;;  %v495_v8 = vpop.f32.mrb[11].mxu1 }
 0x3fe   :  { %523 = vst [vmem:[#allocation13] sm:$0xff] %v493_v5  ;;  %v496_v9 = vadd.f32 %v576_v1, %v495_v8 }
 0x3ff   :  { %526 = vst [vmem:[#allocation13 + $0x18] sm:$0xff] %v504_v7 }
 0x400   :  { %524 = vst [vmem:[#allocation13 + $0x8] sm:$0xff] %v496_v9 }
 0x402   :  { %v663_v10 = vpop.f32.mrb[12].mxu1 }
 0x403   :  { %v517_v11 = vadd.f32 %v663_v10, %v576_v1  ;;  %v508_v12 = vpop.f32.mrb[13].mxu1 }
 0x404   :  { %v509_v13 = vadd.f32 %v576_v1, %v508_v12  ;;  %v664_v14 = vpop.f32.mrb[14].mxu1 }
 0x405   :  { %529 = vst [vmem:[#allocation13 + $0x30] sm:$0xff] %v517_v11  ;;  %v520_v15 = vadd.f32 %v664_v14, %v576_v1  ;;  %v511_v16 = vpop.f32.mrb[15].mxu1 }
 0x406   :  { %527 = vst [vmem:[#allocation13 + $0x20] sm:$0xff] %v509_v13  ;;  %v512_v17 = vadd.f32 %v576_v1, %v511_v16 }
 0x407   :  { %530 = vst [vmem:[#allocation13 + $0x38] sm:$0xff] %v520_v15 }
 0x408   :  { %528 = vst [vmem:[#allocation13 + $0x28] sm:$0xff] %v512_v17 }
 0x409   :  { %831 = shalt.err (!%p828_p10)
}
 0x40a   :  { %s832_s22 = scalar_lea.hbm %s1039_s6, 1024 }
 0x40b   :  { %p833_p11 = scmp.ne.s32.totalorder %s1039_s6, %s832_s22  ;;  %p836_p12 = scmp.lt.u32.totalorder %s832_s22, %s1039_s6 }
 0x40d   :  { %p838_p13 = pnand %p836_p12, %p833_p11 }
 0x40f   :  { %841 = shalt.err (!%p838_p13)
}
 0x410   :  { %s861_s29 = smov 128   ;;  %s862_s30 = smov 8  }
 0x411   :  { %542 = dma.vmem_to_hbm [thread:$0]  %s537_s10, 1024, %s1039_s6, [#allocation4], %s861_s29, %s861_s29, %s862_s30  }
 0x412   :  { %850 = dma.done.wait [#allocation4], 1024  }
 0x413   :  { %851 = vsyncadd [#allocation4], 4294966272 }
 0x414   :  { %546 = vsyncpa [#allocation3], 1 }
 0x415   :  { %547 = vsyncpa [#allocation6], 1 }
 0x416   :  { %548 = vsyncpa [#allocation9], 1 }
 0x417   :  { %549 = vsyncpa [#allocation12], 1 }
 0x418   :  { %550 = vsyncpa [#allocation4], 1 }

</bundles_post_ra>
